<compile_context>
chip_gen: v7x
topology: tpu7x:2x2x1
jax: 0.10.0
libtpu: 0.0.40
codegen_flags: <defaults>
</compile_context>

<pallas_src>
import jax
import jax.numpy as jnp
from jax.experimental import pallas as pl
from jax.experimental.pallas import tpu as pltpu


def _round_down(x, m):
    return max(m, (x // m) * m)


def _gemv_kernel(x_ref, w_ref, b_ref, o_ref, acc_ref):
    """One (row-tile, k-tile) step of y = x @ w^T + b.

    x_ref  : (TB, TK) VMEM  input rows (feature slice)
    w_ref  : (1, TK)  VMEM  weight slice (lane-dense, no transpose)
    b_ref  : (1, 1)   SMEM  bias scalar
    o_ref  : (1, TB)  VMEM  lane-dense output slab for this row tile
    acc_ref: (1, TB)  VMEM  f32 partial-sum accumulator (persists over k)
    """
    k = pl.program_id(1)

    @pl.when(k == 0)
    def _():
        acc_ref[...] = jnp.zeros_like(acc_ref)

    # Lane-major (1, TB) partial sums straight off the (otherwise idle) MXU:
    # contract the feature dim of w (1, TK) with the feature dim of x (TB, TK).
    # This avoids a (TB,) sublane->lane relayout through the XLU.
    acc_ref[...] += jax.lax.dot_general(
        w_ref[...].astype(jnp.float32),
        x_ref[...].astype(jnp.float32),
        dimension_numbers=(((1,), (1,)), ((), ())),
        preferred_element_type=jnp.float32,
    )

    @pl.when(k == pl.num_programs(1) - 1)
    def _():
        o_ref[...] = (acc_ref[...] + b_ref[0, 0]).astype(o_ref.dtype)


def linear_regression_forward(
    x, weight, bias, *,
    target_tile_bytes=4 * 1024 * 1024,   # HBM bytes of x moved per grid step
    vmem_x_budget=20 * 1024 * 1024,      # budget for double-buffered x tiles
    max_tk=8192,                         # features per k-step (multiple of 128)
    vmem_limit_bytes=32 * 1024 * 1024,
):
    """Forward of LinearRegressionL1L2: x (B, D), weight (1, D), bias (1,) -> (B, 1)."""
    B, D = x.shape
    itemsize = jnp.dtype(x.dtype).itemsize

    # ---- feature (reduction) tiling: keeps very wide D inside VMEM -----------
    if D <= max_tk:
        TK = D                          # full feature dim, single k step
        D_pad = D
    else:
        TK = _round_down(max_tk, 128)
        D_pad = ((D + TK - 1) // TK) * TK
    num_k = D_pad // TK

    # ---- batch tiling: MiB-scale tiles amortize the per-grid-step overhead ---
    # HBM target: TB * TK * itemsize ~ target_tile_bytes.
    tb_target = _round_down(target_tile_bytes // max(1, TK * itemsize), 128)
    # VMEM cap: 2 (double-buffer) * TB * TK(lane-padded to 128) * itemsize.
    tk_lanes = ((TK + 127) // 128) * 128
    tb_vmem = _round_down(vmem_x_budget // max(1, 2 * tk_lanes * itemsize), 128)
    TB = min(tb_target, tb_vmem)

    if B <= TB:
        TB = B                          # single row tile; full-dim block, no padding
        B_pad = B
        x_rows = x
    else:
        pad_rows = (-B) % TB            # TB is a multiple of 128 here
        x_rows = jnp.pad(x, ((0, pad_rows), (0, 0))) if pad_rows else x
        B_pad = B + pad_rows
    num_rows = B_pad // TB

    # Zero-pad the feature dim (padded columns contribute 0 to the dot product).
    if D_pad != D:
        x_p = jnp.pad(x_rows, ((0, 0), (0, D_pad - D)))
        w_p = jnp.pad(weight.reshape(1, D), ((0, 0), (0, D_pad - D)))
    else:
        x_p = x_rows
        w_p = weight.reshape(1, D)      # lane-dense weight, no transpose

    b = bias.reshape(1, 1)              # scalar, lives in SMEM

    cost = pl.CostEstimate(
        flops=2 * B_pad * D_pad,
        transcendentals=0,
        bytes_accessed=(B_pad * D_pad + num_rows * D_pad + B_pad) * itemsize + 4,
    )

    out = pl.pallas_call(
        _gemv_kernel,
        out_shape=jax.ShapeDtypeStruct((1, B_pad), x.dtype),
        grid_spec=pltpu.PrefetchScalarGridSpec(
            num_scalar_prefetch=0,
            grid=(num_rows, num_k),
            in_specs=[
                pl.BlockSpec((TB, TK), lambda i, k: (i, k)),            # x tile
                pl.BlockSpec((1, TK), lambda i, k: (0, k)),             # weight slice
                pl.BlockSpec(memory_space=pltpu.MemorySpace.SMEM),      # bias scalar
            ],
            out_specs=pl.BlockSpec((1, TB), lambda i, k: (0, i)),       # lane-dense out
            scratch_shapes=[pltpu.VMEM((1, TB), jnp.float32)],          # f32 accumulator
        ),
        compiler_params=pltpu.CompilerParams(
            # Row tiles are independent ("parallel"); k is the reduction axis
            # ("arbitrary", last).
            # TODO(synk): on v7x, pltpu.CORE_PARALLEL on the row axis (or
            # pl.core_map over create_tensorcore_mesh) would shard row tiles
            # across both TensorCores; kept portable here.
            dimension_semantics=("parallel", "arbitrary"),
            vmem_limit_bytes=vmem_limit_bytes,
        ),
        cost_estimate=cost,
    )(x_p, w_p, b)

    # (1, B_pad) -> (B, 1); row order preserved, padded rows sliced off.
    return out.reshape(B_pad, 1)[:B]


if __name__ == "__main__":
    key = jax.random.PRNGKey(0)
    kx, kw, kb, kx2 = jax.random.split(key, 4)

    # Small shapes consistent with the module: batch=8, input_dim=32.
    batch, input_dim = 8, 32
    bound = 1.0 / jnp.sqrt(jnp.float32(input_dim))
    weight = jax.random.uniform(kw, (1, input_dim), jnp.float32, -bound, bound)
    bias = jax.random.uniform(kb, (1,), jnp.float32, -bound, bound)
    x = jax.random.normal(kx, (batch, input_dim), jnp.float32)

    y = jax.block_until_ready(linear_regression_forward(x, weight, bias))
    y_ref = x @ weight.T + bias
    assert y.shape == (batch, 1)
    assert jnp.allclose(y, y_ref, atol=1e-5, rtol=1e-5)

    # Exercise the multi-row-tile and k-reduction code paths with forced tiny tiles.
    B2, D2 = 300, 256
    w2 = jax.random.uniform(kw, (1, D2), jnp.float32, -bound, bound)
    b2 = jax.random.uniform(kb, (1,), jnp.float32, -bound, bound)
    x2 = jax.random.normal(kx2, (B2, D2), jnp.float32)
    y2 = jax.block_until_ready(
        linear_regression_forward(
            x2, w2, b2, target_tile_bytes=128 * 128 * 4, max_tk=128))
    y2_ref = x2 @ w2.T + b2
    assert y2.shape == (B2, 1)
    assert jnp.allclose(y2, y2_ref, atol=1e-4, rtol=1e-4)

    # TODO(synk): compute_loss (MSE + L1/L2 regularization) is a training-time
    # utility, not part of forward(); it is not implemented as a kernel here.

    print("KERNEL_OK")
</pallas_src>

<mosaic_0001>
module attributes {stable_mosaic.version = 11 : i64} {
  func.func @_gemv_kernel(%arg0: i32, %arg1: i32, %arg2: memref<8x32xf32, #tpu.memory_space<vmem>>, %arg3: memref<1x32xf32, #tpu.memory_space<vmem>>, %arg4: memref<1x1xf32, #tpu.memory_space<smem>>, %arg5: memref<1x8xf32, #tpu.memory_space<vmem>>, %arg6: memref<1x8xf32, #tpu.memory_space<vmem>>) attributes {dimension_semantics = [#tpu.dimension_semantics<parallel>, #tpu.dimension_semantics<arbitrary>], iteration_bounds = array<i64: 1, 1>, scalar_prefetch = 0 : i64, scratch_operands = 1 : i64, tpu.core_type = #tpu.core_type<tc>, window_params = [{transform_indices = @transform_0, window_bounds = array<i64: 8, 32>}, {transform_indices = @transform_1, window_bounds = array<i64: 1, 32>}, {transform_indices = @transform_2, window_bounds = array<i64: 1, 1>}, {transform_indices = @transform_3, window_bounds = array<i64: 1, 8>}]} {
    %c0_i32 = arith.constant 0 : i32
    %0 = arith.cmpi eq, %arg1, %c0_i32 : i32
    %1 = arith.extui %0 : i1 to i32
    %c0_i32_0 = arith.constant 0 : i32
    %2 = arith.cmpi ne, %1, %c0_i32_0 : i32
    scf.if %2 {
      %cst_10 = arith.constant 0.000000e+00 : f32
      %12 = vector.broadcast %cst_10 : f32 to vector<1x8xf32>
      %c0_11 = arith.constant 0 : index
      %c0_12 = arith.constant 0 : index
      %13 = vector.load %arg6[%c0_11, %c0_12] : memref<1x8xf32, #tpu.memory_space<vmem>>, vector<1x8xf32>
      tpu.vector_store %arg6[%c0_11, %c0_12], %12 {strides = array<i32>} : memref<1x8xf32, #tpu.memory_space<vmem>>, vector<1x8xf32>,
    } else {
    }
    %c0 = arith.constant 0 : index
    %c0_1 = arith.constant 0 : index
    %3 = vector.load %arg6[%c0, %c0_1] : memref<1x8xf32, #tpu.memory_space<vmem>>, vector<1x8xf32>
    %c0_2 = arith.constant 0 : index
    %c0_3 = arith.constant 0 : index
    %4 = vector.load %arg3[%c0_2, %c0_3] : memref<1x32xf32, #tpu.memory_space<vmem>>, vector<1x32xf32>
    %c0_4 = arith.constant 0 : index
    %c0_5 = arith.constant 0 : index
    %5 = vector.load %arg2[%c0_4, %c0_5] : memref<8x32xf32, #tpu.memory_space<vmem>>, vector<8x32xf32>
    %cst = arith.constant dense<0.000000e+00> : vector<1x8xf32>
    %6 = tpu.matmul %4, %5, %cst {dimension_numbers = #tpu.dot_dimension_numbers<[1], [1], [0], [0], [0, 0, 1, 0], [], []>} : vector<1x32xf32>, vector<8x32xf32>, vector<1x8xf32> -> vector<1x8xf32>
    %7 = arith.addf %3, %6 : vector<1x8xf32>
    %c0_6 = arith.constant 0 : index
    %c0_7 = arith.constant 0 : index
    %8 = vector.load %arg6[%c0_6, %c0_7] : memref<1x8xf32, #tpu.memory_space<vmem>>, vector<1x8xf32>
    tpu.vector_store %arg6[%c0_6, %c0_7], %7 {strides = array<i32>} : memref<1x8xf32, #tpu.memory_space<vmem>>, vector<1x8xf32>,
    %c0_i32_8 = arith.constant 0 : i32
    %9 = arith.cmpi eq, %arg1, %c0_i32_8 : i32
    %10 = arith.extui %9 : i1 to i32
    %c0_i32_9 = arith.constant 0 : i32
    %11 = arith.cmpi ne, %10, %c0_i32_9 : i32
    scf.if %11 {
      %c0_10 = arith.constant 0 : index
      %c0_11 = arith.constant 0 : index
      %12 = vector.load %arg6[%c0_10, %c0_11] : memref<1x8xf32, #tpu.memory_space<vmem>>, vector<1x8xf32>
      %c0_12 = arith.constant 0 : index
      %c0_13 = arith.constant 0 : index
      %13 = memref.load %arg4[%c0_12, %c0_13] : memref<1x1xf32, #tpu.memory_space<smem>>
      %14 = vector.broadcast %13 : f32 to vector<1x8xf32>
      %15 = arith.addf %12, %14 : vector<1x8xf32>
      %c0_14 = arith.constant 0 : index
      %c0_15 = arith.constant 0 : index
      %16 = vector.load %arg5[%c0_14, %c0_15] : memref<1x8xf32, #tpu.memory_space<vmem>>, vector<1x8xf32>
      tpu.vector_store %arg5[%c0_14, %c0_15], %15 {strides = array<i32>} : memref<1x8xf32, #tpu.memory_space<vmem>>, vector<1x8xf32>,
    } else {
    }
    return
  }
  func.func @transform_0(%arg0: i32, %arg1: i32) -> (i32, i32) {
    %c0_i32 = arith.constant 0 : i32
    return %arg0, %arg1 : i32, i32
  }
  func.func @transform_1(%arg0: i32, %arg1: i32) -> (i32, i32) {
    %c0_i32 = arith.constant 0 : i32
    %c0_i32_0 = arith.constant 0 : i32
    return %c0_i32, %arg1 : i32, i32
  }
  func.func @transform_2(%arg0: i32, %arg1: i32) -> (i32, i32) {
    %c0_i32 = arith.constant 0 : i32
    %c0_i32_0 = arith.constant 0 : i32
    %c0_i32_1 = arith.constant 0 : i32
    return %c0_i32, %c0_i32_0 : i32, i32
  }
  func.func @transform_3(%arg0: i32, %arg1: i32) -> (i32, i32) {
    %c0_i32 = arith.constant 0 : i32
    %c0_i32_0 = arith.constant 0 : i32
    return %c0_i32, %arg0 : i32, i32
  }
}

</mosaic_0001>

<bundles_post_ra>
// kernel: tpu_custom_call.1
= control target key start
LH: loop header
LB: loop body
LE: loop exit
PB: predicated region body
PF: predicated region fallthrough
CT: control target
= control target key end

     0   :  { %9 = vsyncpa [#allocation5], 0  ;;  %s258_s0 = inlined_call_operand.hbm [shape: f32[8,32], index: 0, kind: input, shape index: {}]   ;;  %s259_s1 = inlined_call_operand.vmem [shape: f32[1,32], index: 1, kind: input, shape index: {}]   ;;  %s260_s2 = inlined_call_operand.<no memory space> [shape: f32[1,1], index: 2, kind: input, shape index: {}]   ;;  %s261_s3 = inlined_call_operand.hbm [shape: f32[1,8], index: 3, kind: output, shape index: {}]  }
   0x1   :  { %10 = vsyncpa [#allocation6], 0  ;;  %s201_s12 = smov [#allocation4]   ;;  %s153_s16 = scalar_lea.hbm %s258_s0, 128 }
   0x2   :  { %s17_s13 = sshll.u32 %s201_s12, 4  ;;  %p154_p0 = scmp.ne.s32.totalorder %s258_s0, %s153_s16  ;;  %s18_s13 = int_to_ptr.vmem [resolvable:$true] %s17_s13 }
   0x3   :  { %p157_p1 = scmp.lt.u32.totalorder %s153_s16, %s258_s0 }
   0x5   :  { %p159_p2 = pnand %p157_p1, %p154_p0 }
   0x7   :  { %162 = shalt.err (!%p159_p2)
}
   0x8   :  { %s163_s21 = scalar_lea.vmem %s18_s13, 128  ;;  %p168_p4 = scmp.lt.s32.totalorder %s18_s13, %s18_s13 }
   0x9   :  { %p164_p3 = scmp.ne.s32.totalorder %s18_s13, %s163_s21  ;;  %p169_p5 = scmp.lt.s32.totalorder %s163_s21, %s163_s21 }
   0xb   :  { %p170_p6 = por %p169_p5, %p168_p4 }
   0xd   :  { %p171_p7 = pnand %p170_p6, %p164_p3 }
   0xf   :  { %174 = shalt.err (!%p171_p7)
}
  0x10   :  { %20 = dma.hbm_to_vmem [thread:$0]  %s258_s0, 128, %s18_s13, [#allocation5]  }
  0x11   :  { %197 = dma.done.wait [#allocation5], 128  }
  0x12   :  { %198 = vsyncadd [#allocation5], 4294967168  ;;  %vm32_vm0 = vcmask 57344   ;;  %v202_v0 = vmov 0.0   ;;  %vm203_vm1 = vmmov 0   ;;  %vm37_vm2 = vcmask 261120  }
  0x13   :  { %33 = vst.msk [vmem:[#allocation2] sm:$0x1] %vm32_vm0, %v202_v0  ;;  %144 = vmatprep.subr.mxu0 %v202_v0  ;;  %146 = vmatprep.mubr.msk.f32.mxu0 %vm203_vm1, %v202_v0  ;;  %v36_v1 = vld [vmem:[#allocation4] sm:$0xff]  ;;  %v35_v2 = vld [vmem:[%s259_s1] sm:$0x1]  ;;  %v122_v7 = vstv %s260_s2  ;;  %s204_s27 = smov [#allocation7]  }
  0x14   :  { %145 = vmatpush3.xpose.msk.msra.mxu0 %vm37_vm2, %v36_v1  ;;  %s131_s28 = sshll.u32 %s204_s27, 4  ;;  %s132_s28 = int_to_ptr.vmem [resolvable:$true] %s131_s28 }
  0x15   :  { %s175_s29 = scalar_lea.vmem %s132_s28, 16  ;;  %s179_s1 = scalar_lea.vmem %s132_s28, 32 }
  0x16   :  { %p176_p8 = scmp.ne.s32.totalorder %s132_s28, %s175_s29  ;;  %p180_p9 = scmp.lt.s32.totalorder %s132_s28, %s132_s28 }
  0x17   :  { %147 = vmatmul.mubr.msk.f32.vlgmr.msra.gmra.mrb[0].mxu0 %vm37_vm2, %v35_v2  ;;  %p181_p10 = scmp.lt.s32.totalorder %s179_s1, %s175_s29 }
  0x19   :  { %p182_p11 = por %p181_p10, %p180_p9 }
  0x1a   :  { %v34_v3 = vld [vmem:[#allocation2] sm:$0x1] }
  0x1b   :  { %p183_p12 = pnand %p182_p11, %p176_p8 }
  0xea   :  { %v110_v4 = vpop.f32.mrb[0].mxu0 }
  0xeb   :  { %v114_v5 = vadd.f32 %v110_v4, %v34_v3  ;;  %v148_v6 = vpop.f32.mrb[1].mxu0 }
  0xed   :  { %116 = vst.msk [vmem:[#allocation2] sm:$0x1] %vm32_vm0, %v114_v5 }
  0xf4   :  { %v120_v8 = vld [vmem:[#allocation2] sm:$0x1] }
  0xf5   :  { %v123_v9 = vadd.f32 %v122_v7, %v120_v8 }
  0xf7   :  { %124 = vst.msk [vmem:[#allocation7] sm:$0x1] %vm32_vm0, %v123_v9 }
  0xf8   :  { %186 = shalt.err (!%p183_p12)
}
  0xf9   :  { %s187_s5 = scalar_lea.hbm %s261_s3, 16 }
  0xfa   :  { %p188_p13 = scmp.ne.s32.totalorder %s261_s3, %s187_s5  ;;  %p191_p0 = scmp.lt.u32.totalorder %s187_s5, %s261_s3 }
  0xfc   :  { %p193_p1 = pnand %p191_p0, %p188_p13 }
  0xfe   :  { %196 = shalt.err (!%p193_p1)
}
  0xff   :  { %134 = dma.vmem_to_hbm [thread:$0]  %s132_s28, 16, %s261_s3, [#allocation6]  }
 0x100   :  { %199 = dma.done.wait [#allocation6], 16  }
 0x101   :  { %200 = vsyncadd [#allocation6], 4294967280 }
 0x102   :  { %138 = vsyncpa [#allocation5], 1 }
 0x103   :  { %139 = vsyncpa [#allocation6], 1 }

</bundles_post_ra>
